<compile_context>
chip_gen: v7x
topology: tpu7x:2x2x1
jax: 0.10.0
libtpu: 0.0.40
codegen_flags: <defaults>
</compile_context>

<pallas_src>
import jax
import jax.numpy as jnp
from jax import lax
from jax.experimental import pallas as pl
from jax.experimental.pallas import tpu as pltpu
import numpy as np


def _lstm_fwd_kernel(ids_ref,       # [T*B, 1] int32  token ids, time-major flattened
                     emb_ref,       # [V, E]   f32    embedding table
                     wih_f_ref,     # [E, 4H]  bf16   forward  W_ih^T
                     whh_f_ref,     # [H, 4H]  bf16   forward  W_hh^T
                     b_f_ref,       # [1, 4H]  f32    forward  b_ih + b_hh
                     wih_b_ref,     # [E, 4H]  bf16   backward W_ih^T
                     b_b_ref,       # [1, 4H]  f32    backward b_ih + b_hh
                     fc_w_ref,      # [1, 2H]  f32    fc weight row (output_dim == 1)
                     fc_b_ref,      # [1, 1]   f32    fc bias
                     out_ref):      # [B, 1]   f32
    V, E = emb_ref.shape
    H = whh_f_ref.shape[0]
    TB = ids_ref.shape[0]
    B = out_ref.shape[0]
    T = TB // B
    f32, bf16 = jnp.float32, jnp.bfloat16

    # ---- fused embedding gather: one-hot @ table on the MXU (exact in f32) ----
    ids = ids_ref[...]                                             # [T*B, 1]
    iota = lax.broadcasted_iota(jnp.int32, (TB, V), 1)
    onehot = (iota == ids).astype(f32)                             # [T*B, V]
    x_all = jnp.dot(onehot, emb_ref[...],
                    preferred_element_type=f32)                    # [T*B, E]
    x_all_bf = x_all.astype(bf16)

    # ---- hoisted input projection for ALL time steps, bias folded in ---------
    xw_f = jnp.dot(x_all_bf, wih_f_ref[...],
                   preferred_element_type=f32) + b_f_ref[...]      # [T*B, 4H]

    # Backward direction: only its first step (t = T-1, zero state) reaches
    # lstm_out[:, -1, H:], and h0 @ W_hh_bwd == 0, so gates are just x @ W_ih + b.
    x_last_bf = x_all_bf[(T - 1) * B:T * B, :]                     # [B, E]
    gates_b = jnp.dot(x_last_bf, wih_b_ref[...],
                      preferred_element_type=f32) + b_b_ref[...]   # [B, 4H]

    def gate_math(gates, c_prev):
        # PyTorch gate order: i, f, g, o.  All gate math stays f32 (v5e-safe).
        i_g = jax.nn.sigmoid(gates[:, 0 * H:1 * H])
        f_g = jax.nn.sigmoid(gates[:, 1 * H:2 * H])
        g_g = jnp.tanh(gates[:, 2 * H:3 * H])
        o_g = jax.nn.sigmoid(gates[:, 3 * H:4 * H])
        c_new = f_g * c_prev + i_g * g_g
        h_new = o_g * jnp.tanh(c_new)
        return h_new, c_new

    # ---- forward recurrence: only h @ W_hh remains on the serial path --------
    whh_f = whh_f_ref[...]                                         # [H, 4H] bf16
    h = jnp.zeros((B, H), f32)
    c = jnp.zeros((B, H), f32)
    for t in range(T):                      # T is static -> fully unrolled
        gates = (jnp.dot(h.astype(bf16), whh_f,
                         preferred_element_type=f32)
                 + xw_f[t * B:(t + 1) * B, :])
        h, c = gate_math(gates, c)
    h_fwd = h

    # Backward cell step from zero state (c_prev = 0).
    h_bwd, _ = gate_math(gates_b, jnp.zeros((B, H), f32))

    # ---- fc(2H -> 1) as VPU multiply + lane reduction, then sigmoid ----------
    fc_w = fc_w_ref[...]                                           # [1, 2H]
    logits = (jnp.sum(h_fwd * fc_w[:, :H] + h_bwd * fc_w[:, H:2 * H],
                      axis=-1, keepdims=True)
              + fc_b_ref[...])                                     # [B, 1]
    out_ref[...] = jax.nn.sigmoid(logits)


@jax.jit
def lstm_model_forward(token_ids, params):
    """token_ids: [B, T] int32.  Returns sigmoid(fc(lstm_out[:, -1, :])) of shape [B, 1]."""
    B, T = token_ids.shape
    H = params["whh_f"].shape[0]

    # Tiny int reshuffle (64 bytes) so kernel rows are time-major (t, b) pairs.
    ids_tm = jnp.transpose(token_ids.astype(jnp.int32)).reshape(T * B, 1)
    # output_dim == 1 in the module spec: present fc weight as a single row.
    fc_w_row = params["fc_w"].reshape(1, 2 * H)

    kernel_args = (
        ids_tm,
        params["embedding"],
        params["wih_f"], params["whh_f"], params["b_f"],
        params["wih_b"], params["b_b"],
        fc_w_row, params["fc_b"],
    )

    # Single-program kernel: every operand is a full-array block resident in VMEM.
    out = pl.pallas_call(
        _lstm_fwd_kernel,
        out_shape=jax.ShapeDtypeStruct((B, 1), jnp.float32),
        in_specs=[pl.BlockSpec(memory_space=pltpu.MemorySpace.VMEM)
                  for _ in kernel_args],
        out_specs=pl.BlockSpec(memory_space=pltpu.MemorySpace.VMEM),
    )(*kernel_args)
    return out


def make_params(key, vocab_size, embedding_dim, hidden_dim, output_dim=1):
    ks = jax.random.split(key, 9)
    s = 0.1
    f32, bf16 = jnp.float32, jnp.bfloat16

    def rnd(k, shape):
        return s * jax.random.normal(k, shape, f32)

    return {
        "embedding": rnd(ks[0], (vocab_size, embedding_dim)),                       # f32
        # gate order i, f, g, o; stored transposed; MXU operands kept in bf16
        "wih_f": rnd(ks[1], (embedding_dim, 4 * hidden_dim)).astype(bf16),
        "whh_f": rnd(ks[2], (hidden_dim, 4 * hidden_dim)).astype(bf16),
        "b_f":   rnd(ks[3], (1, 4 * hidden_dim)),
        "wih_b": rnd(ks[4], (embedding_dim, 4 * hidden_dim)).astype(bf16),
        "whh_b": rnd(ks[5], (hidden_dim, 4 * hidden_dim)).astype(bf16),  # cannot affect output
        "b_b":   rnd(ks[6], (1, 4 * hidden_dim)),
        "fc_w":  rnd(ks[7], (2 * hidden_dim, output_dim)),
        "fc_b":  rnd(ks[8], (1, output_dim)),
    }


def reference_forward(token_ids, params):
    """Pure-JAX f32 reference replicating PyTorch bidirectional LSTM + fc + sigmoid."""
    f32 = jnp.float32
    hi = jax.lax.Precision.HIGHEST
    x = jnp.take(params["embedding"], token_ids, axis=0).astype(f32)   # [B, T, E]
    B, T, E = x.shape
    H = params["whh_f"].shape[0]
    wih_f = params["wih_f"].astype(f32)
    whh_f = params["whh_f"].astype(f32)
    wih_b = params["wih_b"].astype(f32)
    whh_b = params["whh_b"].astype(f32)

    def cell(x_t, h, c, wih, whh, b):
        g = (jnp.dot(x_t, wih, precision=hi)
             + jnp.dot(h, whh, precision=hi) + b)
        i = jax.nn.sigmoid(g[:, 0 * H:1 * H])
        f = jax.nn.sigmoid(g[:, 1 * H:2 * H])
        gg = jnp.tanh(g[:, 2 * H:3 * H])
        o = jax.nn.sigmoid(g[:, 3 * H:4 * H])
        c = f * c + i * gg
        return o * jnp.tanh(c), c

    h = jnp.zeros((B, H), f32)
    c = jnp.zeros((B, H), f32)
    for t in range(T):
        h, c = cell(x[:, t, :], h, c, wih_f, whh_f, params["b_f"])
    h_fwd = h

    hb, _ = cell(x[:, T - 1, :], jnp.zeros((B, H), f32), jnp.zeros((B, H), f32),
                 wih_b, whh_b, params["b_b"])   # backward-direction output at position T-1

    logits = (jnp.dot(jnp.concatenate([h_fwd, hb], axis=-1), params["fc_w"],
                      precision=hi) + params["fc_b"])
    return jax.nn.sigmoid(logits)


if __name__ == "__main__":
    # Small shapes consistent with the module's forward pass.
    vocab_size, embedding_dim, hidden_dim, output_dim = 50, 32, 32, 1
    B, T = 2, 8

    key = jax.random.PRNGKey(0)
    k_params, k_tokens = jax.random.split(key)
    params = make_params(k_params, vocab_size, embedding_dim, hidden_dim, output_dim)
    token_ids = jax.random.randint(k_tokens, (B, T), 0, vocab_size, dtype=jnp.int32)

    out = jax.block_until_ready(lstm_model_forward(token_ids, params))
    ref = jax.block_until_ready(reference_forward(token_ids, params))

    # bf16 MXU operands (f32 accumulation / f32 gates) => slightly looser tolerance.
    np.testing.assert_allclose(np.asarray(out), np.asarray(ref), rtol=2e-2, atol=2e-3)

    print("KERNEL_OK")
</pallas_src>

<mosaic_0001>
module attributes {stable_mosaic.version = 11 : i64} {
  func.func @_lstm_fwd_kernel(%arg0: memref<16x1xi32, #tpu.memory_space<vmem>>, %arg1: memref<50x32xf32, #tpu.memory_space<vmem>>, %arg2: memref<32x128xbf16, #tpu.memory_space<vmem>>, %arg3: memref<32x128xbf16, #tpu.memory_space<vmem>>, %arg4: memref<1x128xf32, #tpu.memory_space<vmem>>, %arg5: memref<32x128xbf16, #tpu.memory_space<vmem>>, %arg6: memref<1x128xf32, #tpu.memory_space<vmem>>, %arg7: memref<1x64xf32, #tpu.memory_space<vmem>>, %arg8: memref<1x1xf32, #tpu.memory_space<vmem>>, %arg9: memref<2x1xf32, #tpu.memory_space<vmem>>) attributes {dimension_semantics = [], scalar_prefetch = 0 : i64, scratch_operands = 0 : i64, tpu.core_type = #tpu.core_type<tc>} {
    %c0 = arith.constant 0 : index
    %c0_0 = arith.constant 0 : index
    %0 = vector.load %arg0[%c0, %c0_0] : memref<16x1xi32, #tpu.memory_space<vmem>>, vector<16x1xi32>
    %1 = tpu.iota {dimensions = array<i32: 1>} : vector<16x50xi32>
    %2 = vector.broadcast %0 : vector<16x1xi32> to vector<16x50xi32>
    %3 = arith.cmpi eq, %1, %2 : vector<16x50xi32>
    %4 = arith.extui %3 : vector<16x50xi1> to vector<16x50xi32>
    %5 = arith.sitofp %4 : vector<16x50xi32> to vector<16x50xf32>
    %c0_1 = arith.constant 0 : index
    %c0_2 = arith.constant 0 : index
    %6 = vector.load %arg1[%c0_1, %c0_2] : memref<50x32xf32, #tpu.memory_space<vmem>>, vector<50x32xf32>
    %cst = arith.constant dense<0.000000e+00> : vector<16x32xf32>
    %7 = tpu.matmul %5, %6, %cst {dimension_numbers = #tpu.dot_dimension_numbers<[1], [0], [0], [1], [0, 0, 1, 1], [], []>} : vector<16x50xf32>, vector<50x32xf32>, vector<16x32xf32> -> vector<16x32xf32>
    %8 = arith.truncf %7 : vector<16x32xf32> to vector<16x32xbf16>
    %c0_3 = arith.constant 0 : index
    %c0_4 = arith.constant 0 : index
    %9 = vector.load %arg2[%c0_3, %c0_4] : memref<32x128xbf16, #tpu.memory_space<vmem>>, vector<32x128xbf16>
    %cst_5 = arith.constant dense<0.000000e+00> : vector<16x128xf32>
    %10 = tpu.matmul %8, %9, %cst_5 {dimension_numbers = #tpu.dot_dimension_numbers<[1], [0], [0], [1], [0, 0, 1, 1], [], []>} : vector<16x32xbf16>, vector<32x128xbf16>, vector<16x128xf32> -> vector<16x128xf32>
    %c0_6 = arith.constant 0 : index
    %c0_7 = arith.constant 0 : index
    %11 = vector.load %arg4[%c0_6, %c0_7] : memref<1x128xf32, #tpu.memory_space<vmem>>, vector<1x128xf32>
    %12 = vector.broadcast %11 : vector<1x128xf32> to vector<16x128xf32>
    %13 = arith.addf %10, %12 : vector<16x128xf32>
    %14 = vector.extract_strided_slice %8 {offsets = [14, 0], sizes = [2, 32], strides = [1, 1]} : vector<16x32xbf16> to vector<2x32xbf16>
    %c0_8 = arith.constant 0 : index
    %c0_9 = arith.constant 0 : index
    %15 = vector.load %arg5[%c0_8, %c0_9] : memref<32x128xbf16, #tpu.memory_space<vmem>>, vector<32x128xbf16>
    %cst_10 = arith.constant dense<0.000000e+00> : vector<2x128xf32>
    %16 = tpu.matmul %14, %15, %cst_10 {dimension_numbers = #tpu.dot_dimension_numbers<[1], [0], [0], [1], [0, 0, 1, 1], [], []>} : vector<2x32xbf16>, vector<32x128xbf16>, vector<2x128xf32> -> vector<2x128xf32>
    %c0_11 = arith.constant 0 : index
    %c0_12 = arith.constant 0 : index
    %17 = vector.load %arg6[%c0_11, %c0_12] : memref<1x128xf32, #tpu.memory_space<vmem>>, vector<1x128xf32>
    %18 = vector.broadcast %17 : vector<1x128xf32> to vector<2x128xf32>
    %19 = arith.addf %16, %18 : vector<2x128xf32>
    %c0_13 = arith.constant 0 : index
    %c0_14 = arith.constant 0 : index
    %20 = vector.load %arg3[%c0_13, %c0_14] : memref<32x128xbf16, #tpu.memory_space<vmem>>, vector<32x128xbf16>
    %cst_15 = arith.constant 0.000000e+00 : f32
    %21 = vector.broadcast %cst_15 : f32 to vector<2x32xf32>
    %cst_16 = arith.constant 0.000000e+00 : f32
    %22 = vector.broadcast %cst_16 : f32 to vector<2x32xf32>
    %23 = arith.truncf %21 : vector<2x32xf32> to vector<2x32xbf16>
    %cst_17 = arith.constant dense<0.000000e+00> : vector<2x128xf32>
    %24 = tpu.matmul %23, %20, %cst_17 {dimension_numbers = #tpu.dot_dimension_numbers<[1], [0], [0], [1], [0, 0, 1, 1], [], []>} : vector<2x32xbf16>, vector<32x128xbf16>, vector<2x128xf32> -> vector<2x128xf32>
    %25 = vector.extract_strided_slice %13 {offsets = [0, 0], sizes = [2, 128], strides = [1, 1]} : vector<16x128xf32> to vector<2x128xf32>
    %26 = arith.addf %24, %25 : vector<2x128xf32>
    %27 = vector.extract_strided_slice %26 {offsets = [0, 0], sizes = [2, 32], strides = [1, 1]} : vector<2x128xf32> to vector<2x32xf32>
    %28 = arith.negf %27 : vector<2x32xf32>
    %29 = math.exp %28 : vector<2x32xf32>
    %cst_18 = arith.constant 1.000000e+00 : f32
    %30 = vector.broadcast %cst_18 : f32 to vector<2x32xf32>
    %31 = arith.addf %30, %29 : vector<2x32xf32>
    %32 = arith.divf %30, %31 : vector<2x32xf32>
    %33 = vector.extract_strided_slice %26 {offsets = [0, 32], sizes = [2, 32], strides = [1, 1]} : vector<2x128xf32> to vector<2x32xf32>
    %34 = arith.negf %33 : vector<2x32xf32>
    %35 = math.exp %34 : vector<2x32xf32>
    %cst_19 = arith.constant 1.000000e+00 : f32
    %36 = vector.broadcast %cst_19 : f32 to vector<2x32xf32>
    %37 = arith.addf %36, %35 : vector<2x32xf32>
    %38 = arith.divf %36, %37 : vector<2x32xf32>
    %39 = vector.extract_strided_slice %26 {offsets = [0, 64], sizes = [2, 32], strides = [1, 1]} : vector<2x128xf32> to vector<2x32xf32>
    %40 = math.tanh %39 : vector<2x32xf32>
    %41 = vector.extract_strided_slice %26 {offsets = [0, 96], sizes = [2, 32], strides = [1, 1]} : vector<2x128xf32> to vector<2x32xf32>
    %42 = arith.negf %41 : vector<2x32xf32>
    %43 = math.exp %42 : vector<2x32xf32>
    %cst_20 = arith.constant 1.000000e+00 : f32
    %44 = vector.broadcast %cst_20 : f32 to vector<2x32xf32>
    %45 = arith.addf %44, %43 : vector<2x32xf32>
    %46 = arith.divf %44, %45 : vector<2x32xf32>
    %47 = arith.mulf %38, %22 : vector<2x32xf32>
    %48 = arith.mulf %32, %40 : vector<2x32xf32>
    %49 = arith.addf %47, %48 : vector<2x32xf32>
    %50 = math.tanh %49 : vector<2x32xf32>
    %51 = arith.mulf %46, %50 : vector<2x32xf32>
    %52 = arith.truncf %51 : vector<2x32xf32> to vector<2x32xbf16>
    %cst_21 = arith.constant dense<0.000000e+00> : vector<2x128xf32>
    %53 = tpu.matmul %52, %20, %cst_21 {dimension_numbers = #tpu.dot_dimension_numbers<[1], [0], [0], [1], [0, 0, 1, 1], [], []>} : vector<2x32xbf16>, vector<32x128xbf16>, vector<2x128xf32> -> vector<2x128xf32>
    %54 = vector.extract_strided_slice %13 {offsets = [2, 0], sizes = [2, 128], strides = [1, 1]} : vector<16x128xf32> to vector<2x128xf32>
    %55 = arith.addf %53, %54 : vector<2x128xf32>
    %56 = vector.extract_strided_slice %55 {offsets = [0, 0], sizes = [2, 32], strides = [1, 1]} : vector<2x128xf32> to vector<2x32xf32>
    %57 = arith.negf %56 : vector<2x32xf32>
    %58 = math.exp %57 : vector<2x32xf32>
    %cst_22 = arith.constant 1.000000e+00 : f32
    %59 = vector.broadcast %cst_22 : f32 to vector<2x32xf32>
    %60 = arith.addf %59, %58 : vector<2x32xf32>
    %61 = arith.divf %59, %60 : vector<2x32xf32>
    %62 = vector.extract_strided_slice %55 {offsets = [0, 32], sizes = [2, 32], strides = [1, 1]} : vector<2x128xf32> to vector<2x32xf32>
    %63 = arith.negf %62 : vector<2x32xf32>
    %64 = math.exp %63 : vector<2x32xf32>
    %cst_23 = arith.constant 1.000000e+00 : f32
    %65 = vector.broadcast %cst_23 : f32 to vector<2x32xf32>
    %66 = arith.addf %65, %64 : vector<2x32xf32>
    %67 = arith.divf %65, %66 : vector<2x32xf32>
    %68 = vector.extract_strided_slice %55 {offsets = [0, 64], sizes = [2, 32], strides = [1, 1]} : vector<2x128xf32> to vector<2x32xf32>
    %69 = math.tanh %68 : vector<2x32xf32>
    %70 = vector.extract_strided_slice %55 {offsets = [0, 96], sizes = [2, 32], strides = [1, 1]} : vector<2x128xf32> to vector<2x32xf32>
    %71 = arith.negf %70 : vector<2x32xf32>
    %72 = math.exp %71 : vector<2x32xf32>
    %cst_24 = arith.constant 1.000000e+00 : f32
    %73 = vector.broadcast %cst_24 : f32 to vector<2x32xf32>
    %74 = arith.addf %73, %72 : vector<2x32xf32>
    %75 = arith.divf %73, %74 : vector<2x32xf32>
    %76 = arith.mulf %67, %49 : vector<2x32xf32>
    %77 = arith.mulf %61, %69 : vector<2x32xf32>
    %78 = arith.addf %76, %77 : vector<2x32xf32>
    %79 = math.tanh %78 : vector<2x32xf32>
    %80 = arith.mulf %75, %79 : vector<2x32xf32>
    %81 = arith.truncf %80 : vector<2x32xf32> to vector<2x32xbf16>
    %cst_25 = arith.constant dense<0.000000e+00> : vector<2x128xf32>
    %82 = tpu.matmul %81, %20, %cst_25 {dimension_numbers = #tpu.dot_dimension_numbers<[1], [0], [0], [1], [0, 0, 1, 1], [], []>} : vector<2x32xbf16>, vector<32x128xbf16>, vector<2x128xf32> -> vector<2x128xf32>
    %83 = vector.extract_strided_slice %13 {offsets = [4, 0], sizes = [2, 128], strides = [1, 1]} : vector<16x128xf32> to vector<2x128xf32>
    %84 = arith.addf %82, %83 : vector<2x128xf32>
    %85 = vector.extract_strided_slice %84 {offsets = [0, 0], sizes = [2, 32], strides = [1, 1]} : vector<2x128xf32> to vector<2x32xf32>
    %86 = arith.negf %85 : vector<2x32xf32>
    %87 = math.exp %86 : vector<2x32xf32>
    %cst_26 = arith.constant 1.000000e+00 : f32
    %88 = vector.broadcast %cst_26 : f32 to vector<2x32xf32>
    %89 = arith.addf %88, %87 : vector<2x32xf32>
    %90 = arith.divf %88, %89 : vector<2x32xf32>
    %91 = vector.extract_strided_slice %84 {offsets = [0, 32], sizes = [2, 32], strides = [1, 1]} : vector<2x128xf32> to vector<2x32xf32>
    %92 = arith.negf %91 : vector<2x32xf32>
    %93 = math.exp %92 : vector<2x32xf32>
    %cst_27 = arith.constant 1.000000e+00 : f32
    %94 = vector.broadcast %cst_27 : f32 to vector<2x32xf32>
    %95 = arith.addf %94, %93 : vector<2x32xf32>
    %96 = arith.divf %94, %95 : vector<2x32xf32>
    %97 = vector.extract_strided_slice %84 {offsets = [0, 64], sizes = [2, 32], strides = [1, 1]} : vector<2x128xf32> to vector<2x32xf32>
    %98 = math.tanh %97 : vector<2x32xf32>
    %99 = vector.extract_strided_slice %84 {offsets = [0, 96], sizes = [2, 32], strides = [1, 1]} : vector<2x128xf32> to vector<2x32xf32>
    %100 = arith.negf %99 : vector<2x32xf32>
    %101 = math.exp %100 : vector<2x32xf32>
    %cst_28 = arith.constant 1.000000e+00 : f32
    %102 = vector.broadcast %cst_28 : f32 to vector<2x32xf32>
    %103 = arith.addf %102, %101 : vector<2x32xf32>
    %104 = arith.divf %102, %103 : vector<2x32xf32>
    %105 = arith.mulf %96, %78 : vector<2x32xf32>
    %106 = arith.mulf %90, %98 : vector<2x32xf32>
    %107 = arith.addf %105, %106 : vector<2x32xf32>
    %108 = math.tanh %107 : vector<2x32xf32>
    %109 = arith.mulf %104, %108 : vector<2x32xf32>
    %110 = arith.truncf %109 : vector<2x32xf32> to vector<2x32xbf16>
    %cst_29 = arith.constant dense<0.000000e+00> : vector<2x128xf32>
    %111 = tpu.matmul %110, %20, %cst_29 {dimension_numbers = #tpu.dot_dimension_numbers<[1], [0], [0], [1], [0, 0, 1, 1], [], []>} : vector<2x32xbf16>, vector<32x128xbf16>, vector<2x128xf32> -> vector<2x128xf32>
    %112 = vector.extract_strided_slice %13 {offsets = [6, 0], sizes = [2, 128], strides = [1, 1]} : vector<16x128xf32> to vector<2x128xf32>
    %113 = arith.addf %111, %112 : vector<2x128xf32>
    %114 = vector.extract_strided_slice %113 {offsets = [0, 0], sizes = [2, 32], strides = [1, 1]} : vector<2x128xf32> to vector<2x32xf32>
    %115 = arith.negf %114 : vector<2x32xf32>
    %116 = math.exp %115 : vector<2x32xf32>
    %cst_30 = arith.constant 1.000000e+00 : f32
    %117 = vector.broadcast %cst_30 : f32 to vector<2x32xf32>
    %118 = arith.addf %117, %116 : vector<2x32xf32>
    %119 = arith.divf %117, %118 : vector<2x32xf32>
    %120 = vector.extract_strided_slice %113 {offsets = [0, 32], sizes = [2, 32], strides = [1, 1]} : vector<2x128xf32> to vector<2x32xf32>
    %121 = arith.negf %120 : vector<2x32xf32>
    %122 = math.exp %121 : vector<2x32xf32>
    %cst_31 = arith.constant 1.000000e+00 : f32
    %123 = vector.broadcast %cst_31 : f32 to vector<2x32xf32>
    %124 = arith.addf %123, %122 : vector<2x32xf32>
    %125 = arith.divf %123, %124 : vector<2x32xf32>
    %126 = vector.extract_strided_slice %113 {offsets = [0, 64], sizes = [2, 32], strides = [1, 1]} : vector<2x128xf32> to vector<2x32xf32>
    %127 = math.tanh %126 : vector<2x32xf32>
    %128 = vector.extract_strided_slice %113 {offsets = [0, 96], sizes = [2, 32], strides = [1, 1]} : vector<2x128xf32> to vector<2x32xf32>
    %129 = arith.negf %128 : vector<2x32xf32>
    %130 = math.exp %129 : vector<2x32xf32>
    %cst_32 = arith.constant 1.000000e+00 : f32
    %131 = vector.broadcast %cst_32 : f32 to vector<2x32xf32>
    %132 = arith.addf %131, %130 : vector<2x32xf32>
    %133 = arith.divf %131, %132 : vector<2x32xf32>
    %134 = arith.mulf %125, %107 : vector<2x32xf32>
    %135 = arith.mulf %119, %127 : vector<2x32xf32>
    %136 = arith.addf %134, %135 : vector<2x32xf32>
    %137 = math.tanh %136 : vector<2x32xf32>
    %138 = arith.mulf %133, %137 : vector<2x32xf32>
    %139 = arith.truncf %138 : vector<2x32xf32> to vector<2x32xbf16>
    %cst_33 = arith.constant dense<0.000000e+00> : vector<2x128xf32>
    %140 = tpu.matmul %139, %20, %cst_33 {dimension_numbers = #tpu.dot_dimension_numbers<[1], [0], [0], [1], [0, 0, 1, 1], [], []>} : vector<2x32xbf16>, vector<32x128xbf16>, vector<2x128xf32> -> vector<2x128xf32>
    %141 = vector.extract_strided_slice %13 {offsets = [8, 0], sizes = [2, 128], strides = [1, 1]} : vector<16x128xf32> to vector<2x128xf32>
    %142 = arith.addf %140, %141 : vector<2x128xf32>
    %143 = vector.extract_strided_slice %142 {offsets = [0, 0], sizes = [2, 32], strides = [1, 1]} : vector<2x128xf32> to vector<2x32xf32>
    %144 = arith.negf %143 : vector<2x32xf32>
    %145 = math.exp %144 : vector<2x32xf32>
    %cst_34 = arith.constant 1.000000e+00 : f32
    %146 = vector.broadcast %cst_34 : f32 to vector<2x32xf32>
    %147 = arith.addf %146, %145 : vector<2x32xf32>
    %148 = arith.divf %146, %147 : vector<2x32xf32>
    %149 = vector.extract_strided_slice %142 {offsets = [0, 32], sizes = [2, 32], strides = [1, 1]} : vector<2x128xf32> to vector<2x32xf32>
    %150 = arith.negf %149 : vector<2x32xf32>
    %151 = math.exp %150 : vector<2x32xf32>
    %cst_35 = arith.constant 1.000000e+00 : f32
    %152 = vector.broadcast %cst_35 : f32 to vector<2x32xf32>
    %153 = arith.addf %152, %151 : vector<2x32xf32>
    %154 = arith.divf %152, %153 : vector<2x32xf32>
    %155 = vector.extract_strided_slice %142 {offsets = [0, 64], sizes = [2, 32], strides = [1, 1]} : vector<2x128xf32> to vector<2x32xf32>
    %156 = math.tanh %155 : vector<2x32xf32>
    %157 = vector.extract_strided_slice %142 {offsets = [0, 96], sizes = [2, 32], strides = [1, 1]} : vector<2x128xf32> to vector<2x32xf32>
    %158 = arith.negf %157 : vector<2x32xf32>
    %159 = math.exp %158 : vector<2x32xf32>
    %cst_36 = arith.constant 1.000000e+00 : f32
    %160 = vector.broadcast %cst_36 : f32 to vector<2x32xf32>
    %161 = arith.addf %160, %159 : vector<2x32xf32>
    %162 = arith.divf %160, %161 : vector<2x32xf32>
    %163 = arith.mulf %154, %136 : vector<2x32xf32>
    %164 = arith.mulf %148, %156 : vector<2x32xf32>
    %165 = arith.addf %163, %164 : vector<2x32xf32>
    %166 = math.tanh %165 : vector<2x32xf32>
    %167 = arith.mulf %162, %166 : vector<2x32xf32>
    %168 = arith.truncf %167 : vector<2x32xf32> to vector<2x32xbf16>
    %cst_37 = arith.constant dense<0.000000e+00> : vector<2x128xf32>
    %169 = tpu.matmul %168, %20, %cst_37 {dimension_numbers = #tpu.dot_dimension_numbers<[1], [0], [0], [1], [0, 0, 1, 1], [], []>} : vector<2x32xbf16>, vector<32x128xbf16>, vector<2x128xf32> -> vector<2x128xf32>
    %170 = vector.extract_strided_slice %13 {offsets = [10, 0], sizes = [2, 128], strides = [1, 1]} : vector<16x128xf32> to vector<2x128xf32>
    %171 = arith.addf %169, %170 : vector<2x128xf32>
    %172 = vector.extract_strided_slice %171 {offsets = [0, 0], sizes = [2, 32], strides = [1, 1]} : vector<2x128xf32> to vector<2x32xf32>
    %173 = arith.negf %172 : vector<2x32xf32>
    %174 = math.exp %173 : vector<2x32xf32>
    %cst_38 = arith.constant 1.000000e+00 : f32
    %175 = vector.broadcast %cst_38 : f32 to vector<2x32xf32>
    %176 = arith.addf %175, %174 : vector<2x32xf32>
    %177 = arith.divf %175, %176 : vector<2x32xf32>
    %178 = vector.extract_strided_slice %171 {offsets = [0, 32], sizes = [2, 32], strides = [1, 1]} : vector<2x128xf32> to vector<2x32xf32>
    %179 = arith.negf %178 : vector<2x32xf32>
    %180 = math.exp %179 : vector<2x32xf32>
    %cst_39 = arith.constant 1.000000e+00 : f32
    %181 = vector.broadcast %cst_39 : f32 to vector<2x32xf32>
    %182 = arith.addf %181, %180 : vector<2x32xf32>
    %183 = arith.divf %181, %182 : vector<2x32xf32>
    %184 = vector.extract_strided_slice %171 {offsets = [0, 64], sizes = [2, 32], strides = [1, 1]} : vector<2x128xf32> to vector<2x32xf32>
    %185 = math.tanh %184 : vector<2x32xf32>
    %186 = vector.extract_strided_slice %171 {offsets = [0, 96], sizes = [2, 32], strides = [1, 1]} : vector<2x128xf32> to vector<2x32xf32>
    %187 = arith.negf %186 : vector<2x32xf32>
    %188 = math.exp %187 : vector<2x32xf32>
    %cst_40 = arith.constant 1.000000e+00 : f32
    %189 = vector.broadcast %cst_40 : f32 to vector<2x32xf32>
    %190 = arith.addf %189, %188 : vector<2x32xf32>
    %191 = arith.divf %189, %190 : vector<2x32xf32>
    %192 = arith.mulf %183, %165 : vector<2x32xf32>
    %193 = arith.mulf %177, %185 : vector<2x32xf32>
    %194 = arith.addf %192, %193 : vector<2x32xf32>
    %195 = math.tanh %194 : vector<2x32xf32>
    %196 = arith.mulf %191, %195 : vector<2x32xf32>
    %197 = arith.truncf %196 : vector<2x32xf32> to vector<2x32xbf16>
    %cst_41 = arith.constant dense<0.000000e+00> : vector<2x128xf32>
    %198 = tpu.matmul %197, %20, %cst_41 {dimension_numbers = #tpu.dot_dimension_numbers<[1], [0], [0], [1], [0, 0, 1, 1], [], []>} : vector<2x32xbf16>, vector<32x128xbf16>, vector<2x128xf32> -> vector<2x128xf32>
    %199 = vector.extract_strided_slice %13 {offsets = [12, 0], sizes = [2, 128], strides = [1, 1]} : vector<16x128xf32> to vector<2x128xf32>
    %200 = arith.addf %198, %199 : vector<2x128xf32>
    %201 = vector.extract_strided_slice %200 {offsets = [0, 0], sizes = [2, 32], strides = [1, 1]} : vector<2x128xf32> to vector<2x32xf32>
    %202 = arith.negf %201 : vector<2x32xf32>
    %203 = math.exp %202 : vector<2x32xf32>
    %cst_42 = arith.constant 1.000000e+00 : f32
    %204 = vector.broadcast %cst_42 : f32 to vector<2x32xf32>
    %205 = arith.addf %204, %203 : vector<2x32xf32>
    %206 = arith.divf %204, %205 : vector<2x32xf32>
    %207 = vector.extract_strided_slice %200 {offsets = [0, 32], sizes = [2, 32], strides = [1, 1]} : vector<2x128xf32> to vector<2x32xf32>
    %208 = arith.negf %207 : vector<2x32xf32>
    %209 = math.exp %208 : vector<2x32xf32>
    %cst_43 = arith.constant 1.000000e+00 : f32
    %210 = vector.broadcast %cst_43 : f32 to vector<2x32xf32>
    %211 = arith.addf %210, %209 : vector<2x32xf32>
    %212 = arith.divf %210, %211 : vector<2x32xf32>
    %213 = vector.extract_strided_slice %200 {offsets = [0, 64], sizes = [2, 32], strides = [1, 1]} : vector<2x128xf32> to vector<2x32xf32>
    %214 = math.tanh %213 : vector<2x32xf32>
    %215 = vector.extract_strided_slice %200 {offsets = [0, 96], sizes = [2, 32], strides = [1, 1]} : vector<2x128xf32> to vector<2x32xf32>
    %216 = arith.negf %215 : vector<2x32xf32>
    %217 = math.exp %216 : vector<2x32xf32>
    %cst_44 = arith.constant 1.000000e+00 : f32
    %218 = vector.broadcast %cst_44 : f32 to vector<2x32xf32>
    %219 = arith.addf %218, %217 : vector<2x32xf32>
    %220 = arith.divf %218, %219 : vector<2x32xf32>
    %221 = arith.mulf %212, %194 : vector<2x32xf32>
    %222 = arith.mulf %206, %214 : vector<2x32xf32>
    %223 = arith.addf %221, %222 : vector<2x32xf32>
    %224 = math.tanh %223 : vector<2x32xf32>
    %225 = arith.mulf %220, %224 : vector<2x32xf32>
    %226 = arith.truncf %225 : vector<2x32xf32> to vector<2x32xbf16>
    %cst_45 = arith.constant dense<0.000000e+00> : vector<2x128xf32>
    %227 = tpu.matmul %226, %20, %cst_45 {dimension_numbers = #tpu.dot_dimension_numbers<[1], [0], [0], [1], [0, 0, 1, 1], [], []>} : vector<2x32xbf16>, vector<32x128xbf16>, vector<2x128xf32> -> vector<2x128xf32>
    %228 = vector.extract_strided_slice %13 {offsets = [14, 0], sizes = [2, 128], strides = [1, 1]} : vector<16x128xf32> to vector<2x128xf32>
    %229 = arith.addf %227, %228 : vector<2x128xf32>
    %230 = vector.extract_strided_slice %229 {offsets = [0, 0], sizes = [2, 32], strides = [1, 1]} : vector<2x128xf32> to vector<2x32xf32>
    %231 = arith.negf %230 : vector<2x32xf32>
    %232 = math.exp %231 : vector<2x32xf32>
    %cst_46 = arith.constant 1.000000e+00 : f32
    %233 = vector.broadcast %cst_46 : f32 to vector<2x32xf32>
    %234 = arith.addf %233, %232 : vector<2x32xf32>
    %235 = arith.divf %233, %234 : vector<2x32xf32>
    %236 = vector.extract_strided_slice %229 {offsets = [0, 32], sizes = [2, 32], strides = [1, 1]} : vector<2x128xf32> to vector<2x32xf32>
    %237 = arith.negf %236 : vector<2x32xf32>
    %238 = math.exp %237 : vector<2x32xf32>
    %cst_47 = arith.constant 1.000000e+00 : f32
    %239 = vector.broadcast %cst_47 : f32 to vector<2x32xf32>
    %240 = arith.addf %239, %238 : vector<2x32xf32>
    %241 = arith.divf %239, %240 : vector<2x32xf32>
    %242 = vector.extract_strided_slice %229 {offsets = [0, 64], sizes = [2, 32], strides = [1, 1]} : vector<2x128xf32> to vector<2x32xf32>
    %243 = math.tanh %242 : vector<2x32xf32>
    %244 = vector.extract_strided_slice %229 {offsets = [0, 96], sizes = [2, 32], strides = [1, 1]} : vector<2x128xf32> to vector<2x32xf32>
    %245 = arith.negf %244 : vector<2x32xf32>
    %246 = math.exp %245 : vector<2x32xf32>
    %cst_48 = arith.constant 1.000000e+00 : f32
    %247 = vector.broadcast %cst_48 : f32 to vector<2x32xf32>
    %248 = arith.addf %247, %246 : vector<2x32xf32>
    %249 = arith.divf %247, %248 : vector<2x32xf32>
    %250 = arith.mulf %241, %223 : vector<2x32xf32>
    %251 = arith.mulf %235, %243 : vector<2x32xf32>
    %252 = arith.addf %250, %251 : vector<2x32xf32>
    %253 = math.tanh %252 : vector<2x32xf32>
    %254 = arith.mulf %249, %253 : vector<2x32xf32>
    %cst_49 = arith.constant 0.000000e+00 : f32
    %255 = vector.broadcast %cst_49 : f32 to vector<2x32xf32>
    %256 = vector.extract_strided_slice %19 {offsets = [0, 0], sizes = [2, 32], strides = [1, 1]} : vector<2x128xf32> to vector<2x32xf32>
    %257 = arith.negf %256 : vector<2x32xf32>
    %258 = math.exp %257 : vector<2x32xf32>
    %cst_50 = arith.constant 1.000000e+00 : f32
    %259 = vector.broadcast %cst_50 : f32 to vector<2x32xf32>
    %260 = arith.addf %259, %258 : vector<2x32xf32>
    %261 = arith.divf %259, %260 : vector<2x32xf32>
    %262 = vector.extract_strided_slice %19 {offsets = [0, 32], sizes = [2, 32], strides = [1, 1]} : vector<2x128xf32> to vector<2x32xf32>
    %263 = arith.negf %262 : vector<2x32xf32>
    %264 = math.exp %263 : vector<2x32xf32>
    %cst_51 = arith.constant 1.000000e+00 : f32
    %265 = vector.broadcast %cst_51 : f32 to vector<2x32xf32>
    %266 = arith.addf %265, %264 : vector<2x32xf32>
    %267 = arith.divf %265, %266 : vector<2x32xf32>
    %268 = vector.extract_strided_slice %19 {offsets = [0, 64], sizes = [2, 32], strides = [1, 1]} : vector<2x128xf32> to vector<2x32xf32>
    %269 = math.tanh %268 : vector<2x32xf32>
    %270 = vector.extract_strided_slice %19 {offsets = [0, 96], sizes = [2, 32], strides = [1, 1]} : vector<2x128xf32> to vector<2x32xf32>
    %271 = arith.negf %270 : vector<2x32xf32>
    %272 = math.exp %271 : vector<2x32xf32>
    %cst_52 = arith.constant 1.000000e+00 : f32
    %273 = vector.broadcast %cst_52 : f32 to vector<2x32xf32>
    %274 = arith.addf %273, %272 : vector<2x32xf32>
    %275 = arith.divf %273, %274 : vector<2x32xf32>
    %276 = arith.mulf %267, %255 : vector<2x32xf32>
    %277 = arith.mulf %261, %269 : vector<2x32xf32>
    %278 = arith.addf %276, %277 : vector<2x32xf32>
    %279 = math.tanh %278 : vector<2x32xf32>
    %280 = arith.mulf %275, %279 : vector<2x32xf32>
    %c0_53 = arith.constant 0 : index
    %c0_54 = arith.constant 0 : index
    %281 = vector.load %arg7[%c0_53, %c0_54] : memref<1x64xf32, #tpu.memory_space<vmem>>, vector<1x64xf32>
    %282 = vector.extract_strided_slice %281 {offsets = [0, 0], sizes = [1, 32], strides = [1, 1]} : vector<1x64xf32> to vector<1x32xf32>
    %283 = vector.broadcast %282 : vector<1x32xf32> to vector<2x32xf32>
    %284 = arith.mulf %254, %283 : vector<2x32xf32>
    %285 = vector.extract_strided_slice %281 {offsets = [0, 32], sizes = [1, 32], strides = [1, 1]} : vector<1x64xf32> to vector<1x32xf32>
    %286 = vector.broadcast %285 : vector<1x32xf32> to vector<2x32xf32>
    %287 = arith.mulf %280, %286 : vector<2x32xf32>
    %288 = arith.addf %284, %287 : vector<2x32xf32>
    %cst_55 = arith.constant dense<0.000000e+00> : vector<2xf32>
    %289 = vector.multi_reduction <add>, %288, %cst_55 [1] : vector<2x32xf32> to vector<2xf32>
    %290 = vector.shape_cast %289 : vector<2xf32> to vector<2x1xf32>
    %c0_56 = arith.constant 0 : index
    %c0_57 = arith.constant 0 : index
    %291 = vector.load %arg8[%c0_56, %c0_57] : memref<1x1xf32, #tpu.memory_space<vmem>>, vector<1x1xf32>
    %292 = vector.broadcast %291 : vector<1x1xf32> to vector<2x1xf32>
    %293 = arith.addf %290, %292 : vector<2x1xf32>
    %294 = arith.negf %293 : vector<2x1xf32>
    %295 = math.exp %294 : vector<2x1xf32>
    %cst_58 = arith.constant 1.000000e+00 : f32
    %296 = vector.broadcast %cst_58 : f32 to vector<2x1xf32>
    %297 = arith.addf %296, %295 : vector<2x1xf32>
    %298 = arith.divf %296, %297 : vector<2x1xf32>
    %c0_59 = arith.constant 0 : index
    %c0_60 = arith.constant 0 : index
    %299 = vector.load %arg9[%c0_59, %c0_60] : memref<2x1xf32, #tpu.memory_space<vmem>>, vector<2x1xf32>
    tpu.vector_store %arg9[%c0_59, %c0_60], %298 {strides = array<i32>} : memref<2x1xf32, #tpu.memory_space<vmem>>, vector<2x1xf32>,
    return
  }
}

</mosaic_0001>

<bundles_post_ra>
// kernel: lstm_model_forward.1
= control target key start
LH: loop header
LB: loop body
LE: loop exit
PB: predicated region body
PF: predicated region fallthrough
CT: control target
= control target key end

     0   :  { %v1213_v0 = vmov 0   ;;  %v1214_v9 = vmov 0.0   ;;  %vm65_vm0 = vcmask 1041408   ;;  %v37_v15 = vlaneseq  ;;  %s1216_s15 = smov 64   ;;  %s1451_s0 = inlined_call_operand.vmem [shape: s32[16,1], index: 0, kind: input, shape index: {}]   ;;  %s1452_s1 = inlined_call_operand.vmem [shape: f32[50,32], index: 1, kind: input, shape index: {}]   ;;  %s1453_s3 = inlined_call_operand.vmem [shape: bf16[32,128], index: 3, kind: input, shape index: {}]   ;;  %s1454_s2 = inlined_call_operand.vmem [shape: bf16[32,128], index: 2, kind: input, shape index: {}]   ;;  %s1455_s5 = inlined_call_operand.vmem [shape: bf16[32,128], index: 5, kind: input, shape index: {}]   ;;  %s1456_s4 = inlined_call_operand.vmem [shape: f32[1,128], index: 4, kind: input, shape index: {}]   ;;  %s1457_s6 = inlined_call_operand.vmem [shape: f32[1,128], index: 6, kind: input, shape index: {}]   ;;  %s1458_s7 = inlined_call_operand.vmem [shape: f32[1,64], index: 7, kind: input, shape index: {}]   ;;  %s1459_s8 = inlined_call_operand.<no memory space> [shape: f32[1,1], index: 8, kind: input, shape index: {}]   ;;  %s1460_s9 = inlined_call_operand.vmem [shape: f32[2,1], index: 9, kind: output, shape index: {}]  }
   0x1   :  { %1130 = vset.pattern.permute.xlu0 %v1213_v0  ;;  %v35_v1 = vld [vmem:[%s1451_s0] sm:$0xff]  ;;  %v52_v3 = vld [vmem:[%s1452_s1 + $0x8] sm:$0xff]  ;;  %v53_v4 = vld [vmem:[%s1452_s1 + $0x10] sm:$0xff]  ;;  %1032 = vmatprep.subr.bf16.mxu1 %v1214_v9  ;;  %vm58_vm1 = vcmask 408576   ;;  %vm1215_vm4 = vmmov 0   ;;  %vm168_vm5 = vcmask 261120  }
   0x2   :  { %v51_v2 = vld [vmem:[%s1452_s1] sm:$0xff]  ;;  %40 = vperm.xlu0 %1130, %v35_v1   ;;  %v54_v5 = vld [vmem:[%s1452_s1 + $0x18] sm:$0xff]  ;;  %v36_v6 = vld [vmem:[%s1451_s0 + $0x8] sm:$0xff]  ;;  %v38_v16 = vand.u32 127, %v37_v15  ;;  %1036 = vmatprep.mubr.msk.bf16.mxu1 %vm1215_vm4, %v1214_v9  ;;  %vm918_vm6 = vcmask 254976   ;;  %vm936_vm7 = vcmask 1024  }
   0x3   :  { %v1112_v7 = vpack.c.bf16 %v52_v3, %v51_v2  ;;  %v1116_v8 = vpack.c.bf16 %v54_v5, %v53_v4  ;;  %v55_v10 = vld [vmem:[%s1452_s1 + $0x20] sm:$0xff]  ;;  %v56_v11 = vld [vmem:[%s1452_s1 + $0x28] sm:$0xff]  ;;  %v57_v14 = vld [vmem:[%s1452_s1 + $0x30] sm:$0x3] }
   0x4   :  { %v1120_v12 = vpack.c.bf16 %v56_v11, %v55_v10  ;;  %v1132_v13 = vld [vmem:[%s1454_s2] sm:$0xff]   ;;  %v1314_v22 = vld [vmem:[%s1453_s3 + $0x8] sm:$0xff]  }
   0x5   :  { %1113 = vmatprep.subr.bf16.mxu0 %v1112_v7  ;;  %1033 = vmatpush3.bf16.msra.mxu1 %v1132_v13  ;;  %v1306_v20 = vld [vmem:[%s1453_s3] sm:$0xff]   ;;  %v1134_v23 = vld [vmem:[%s1454_s2 + $0x8] sm:$0xff]  }
   0x6   :  { %43 = vperm.xlu0 %1130, %v36_v6   ;;  %1115 = vmatpush3.bf16.msra.mxu0 %v1112_v7  ;;  %v1135_v26 = vld [vmem:[%s1455_s5] sm:$0xff]   ;;  %v1136_v28 = vld [vmem:[%s1455_s5 + $0x8] sm:$0xff]  }
   0x7   :  { %1117 = vmatprep.subr.bf16.mxu0 %v1116_v8  ;;  %1034 = vmatprep.subr.bf16.mxu1 %v1214_v9  ;;  %v947_v34 = vld [vmem:[%s1456_s4] ss:$0 sm:$0xff]  ;;  %s1217_s4 = smov 32  }
   0x9   :  { %1035 = vmatpush3.bf16.msra.mxu1 %v1134_v23 }
   0xa   :  { %1119 = vmatpush3.bf16.msra.mxu0 %v1116_v8  ;;  %1040 = vmatprep.subr.bf16.mxu1 %v1214_v9 }
   0xb   :  { %1121 = vmatprep.subr.bf16.mxu0 %v1120_v12 }
   0xe   :  { %1123 = vmatpush3.bf16.msra.mxu0 %v1120_v12 }
   0xf   :  { %1027 = vmatprep.subr.msk.mxu0 %vm65_vm0, %v57_v14 }
  0x12   :  { %1028 = vmatpush3.msk.msra.mxu0 %vm65_vm0, %v57_v14 }
  0x13   :  { %1048 = vmatprep.subr.bf16.mxu0 %v1214_v9 }
  0x81   :  { %v41_v17 = vpop.permute.xlu0 %40 }
  0x82   :  { %vm45_vm2 = vcmp.eq.s32.totalorder %v38_v16, %v41_v17 }
  0x83   :  { %v942_v18 = vsel %vm45_vm2, 1.0, %v1214_v9 }
  0x84   :  { %1029 = vmatprep.mubr.msk.f32.mxu0 %vm58_vm1, %v942_v18 }
  0x85   :  { %v44_v19 = vpop.permute.xlu0 %43 }
  0x86   :  { %vm46_vm3 = vcmp.eq.s32.totalorder %v38_v16, %v44_v19 }
  0x87   :  { %v943_v21 = vsel %vm46_vm3, 1.0, %v1214_v9 }
  0x88   :  { %1030 = vmatmul.mubr.msk.f32.vlgmr.msra.gmra.mrb[0].mxu0 %vm58_vm1, %v943_v21 }
  0x89   :  { %1049 = vmatpush3.bf16.msra.mxu0 %v1306_v20  ;;  %1052 = vmatprep.mubr.msk.bf16.mxu0 %vm1215_vm4, %v1214_v9 }
  0x8a   :  { %1050 = vmatprep.subr.bf16.mxu0 %v1214_v9 }
  0x8d   :  { %1051 = vmatpush3.bf16.msra.mxu0 %v1314_v22 }
  0x8e   :  { %1064 = vmatprep.subr.bf16.mxu0 %v1214_v9 }
  0x90   :  { %1053 = vmatmul.mubr.bf16.vlgmr.msra.gmra.mrb[4].mxu0 %v1213_v0 }
  0x91   :  { %1065 = vmatpush3.bf16.msra.mxu0 %v1306_v20  ;;  %1068 = vmatprep.mubr.msk.bf16.mxu0 %vm1215_vm4, %v1214_v9 }
  0x92   :  { %1066 = vmatprep.subr.bf16.mxu0 %v1214_v9 }
  0x95   :  { %1067 = vmatpush3.bf16.msra.mxu0 %v1314_v22 }
  0x96   :  { %1080 = vmatprep.subr.bf16.mxu0 %v1214_v9 }
 0x15b   :  { %v1031_v24 = vpop.f32.mrb[0].mxu0 }
 0x15c   :  { %v135_v25 = vpop.f32.mrb[1].mxu0 }
 0x15d   :  { %v144_v27 = vpack.c.bf16 %v1031_v24, %v135_v25 }
 0x15f   :  { %1037 = vmatmul.mubr.msk.bf16.vlgmr.msra.gmra.mrb[0].mxu1 %vm168_vm5, %v144_v27  ;;  %v225_v29 = vrot.slane %v144_v27, 7 }
 0x160   :  { %1041 = vmatpush3.bf16.msra.mxu1 %v1135_v26  ;;  %1044 = vmatprep.mubr.msk.bf16.mxu1 %vm1215_vm4, %v1214_v9 }
 0x161   :  { %1042 = vmatprep.subr.bf16.mxu1 %v1214_v9 }
 0x163   :  { %v334_v30 = vpop.f32.mrb[4].mxu0 }
 0x164   :  { %1043 = vmatpush3.bf16.msra.mxu1 %v1136_v28  ;;  %v1054_v31 = vpop.f32.mrb[5].mxu0 }
 0x165   :  { %1056 = vmatprep.subr.bf16.mxu1 %v1214_v9  ;;  %v337_v32 = vpop.f32.mrb[6].mxu0 }
 0x166   :  { %v1055_v33 = vpop.f32.mrb[7].mxu0 }
 0x167   :  { %1045 = vmatmul.mubr.msk.bf16.vlgmr.msra.gmra.mrb[4].mxu1 %vm168_vm5, %v225_v29 }
 0x168   :  { %1057 = vmatpush3.bf16.msra.mxu1 %v1306_v20  ;;  %1060 = vmatprep.mubr.msk.bf16.mxu1 %vm1215_vm4, %v1214_v9 }
 0x169   :  { %1058 = vmatprep.subr.bf16.mxu1 %v1214_v9 }
 0x16c   :  { %1059 = vmatpush3.bf16.msra.mxu1 %v1314_v22 }
 0x16d   :  { %1072 = vmatprep.subr.bf16.mxu1 %v1214_v9 }
 0x232   :  { %v206_v35 = vpop.f32.mrb[0].mxu1 }
 0x233   :  { %v1353_v36 = vadd.f32 %v947_v34, %v206_v35  ;;  %v1038_v37 = vpop.f32.mrb[1].mxu1 }
 0x234   :  { %v209_v38 = vpop.f32.mrb[2].mxu1 }
 0x235   :  { %v335_v39 = vadd.f32 %v334_v30, %v1353_v36  ;;  %v1356_v40 = vadd.f32 %v947_v34, %v209_v38  ;;  %v1039_v41 = vpop.f32.mrb[3].mxu1  ;;  %v369_v61 = vrot.slane %v1353_v36, 2  ;;  %v442_v19 = vrot.slane %v1353_v36, 4 }
 0x237   :  { %1137 = vtanh.f32 %v335_v39  ;;  %v957_v47 = vmul.f32 -1.442695, %v335_v39 }
 0x239   :  { %1139 = vpow2.f32 %v957_v47 }
 0x23a   :  { %v1358_v42 = vpop.f32.mrb[4].mxu1 }
 0x23b   :  { %v1046_v43 = vpop.f32.mrb[5].mxu1 }
 0x23c   :  { %v278_v44 = vpop.f32.mrb[6].mxu1 }
 0x23d   :  { %v1047_v45 = vpop.f32.mrb[7].mxu1 }
 0x23e   :  { %v515_v45 = vrot.slane %v1353_v36, 6 }
 0x241   :  { %v1138_v46 = vpop.eup %1137 }
 0x242   :  { %349 = vrot.lane.b32.xlu1 %v1138_v46, %s1216_s15 }
 0x243   :  { %v1140_v48 = vpop.eup %1139 }
 0x244   :  { %v343_v49 = vadd.f32 1.0, %v1140_v48 }
 0x246   :  { %1141 = vrcp.f32 %v343_v49 }
 0x250   :  { %v1142_v50 = vpop.eup %1141 }
 0x251   :  { %v347_v53 = vmul.f32 0.0, %v1142_v50 }
 0x2b4   :  { %v350_v51 = vpop.permute.xlu1 %349 }
 0x2b5   :  { %v352_v52 = vmul.f32 %v1142_v50, %v350_v51 }
 0x2b7   :  { %354 = vrot.lane.b32.xlu1 %v352_v52, %s1217_s4 }
 0x329   :  { %v355_v54 = vpop.permute.xlu1 %354 }
 0x32a   :  { %v357_v55 = vadd.f32 %v355_v54, %v347_v53 }
 0x32c   :  { %1143 = vtanh.f32 %v357_v55 }
 0x336   :  { %v1144_v56 = vpop.eup %1143 }
 0x337   :  { %360 = vrot.lane.b32.xlu0 %v1144_v56, %s1216_s15 }
 0x3a9   :  { %v361_v57 = vpop.permute.xlu0 %360 }
 0x3aa   :  { %v363_v58 = vmul.f32 %v1142_v50, %v361_v57 }
 0x3ac   :  { %v364_v59 = vpack.c.bf16 %v363_v58, %v363_v58 }
 0x3ae   :  { %366 = vrot.lane.b32.xlu1 %v364_v59, %s1217_s4 }
 0x420   :  { %v367_v60 = vpop.permute.xlu1 %366 }
 0x421   :  { %1061 = vmatmul.mubr.msk.bf16.vlgmr.msra.gmra.mrb[8].mxu1 %vm168_vm5, %v367_v60 }
 0x422   :  { %1073 = vmatpush3.bf16.msra.mxu1 %v1306_v20  ;;  %1076 = vmatprep.mubr.msk.bf16.mxu1 %vm1215_vm4, %v1214_v9 }
 0x423   :  { %1074 = vmatprep.subr.bf16.mxu1 %v1214_v9 }
 0x426   :  { %1075 = vmatpush3.bf16.msra.mxu1 %v1314_v22 }
 0x427   :  { %1088 = vmatprep.subr.bf16.mxu1 %v1214_v9 }
 0x4f4   :  { %v408_v62 = vpop.f32.mrb[8].mxu1 }
 0x4f5   :  { %v409_v63 = vadd.f32 %v408_v62, %v369_v61  ;;  %v1062_v0 = vpop.f32.mrb[9].mxu1 }
 0x4f6   :  { %v411_v1 = vpop.f32.mrb[10].mxu1 }
 0x4f7   :  { %1145 = vtanh.f32 %v409_v63  ;;  %v1063_v2 = vpop.f32.mrb[11].mxu1  ;;  %v959_v4 = vmul.f32 -1.442695, %v409_v63 }
 0x4f9   :  { %1147 = vpow2.f32 %v959_v4 }
 0x501   :  { %v1146_v3 = vpop.eup %1145 }
 0x502   :  { %423 = vrot.lane.b32.xlu0 %v1146_v3, %s1216_s15 }
 0x503   :  { %v1148_v5 = vpop.eup %1147 }
 0x504   :  { %v417_v6 = vadd.f32 1.0, %v1148_v5 }
 0x506   :  { %1149 = vrcp.f32 %v417_v6 }
 0x510   :  { %v1150_v7 = vpop.eup %1149 }
 0x511   :  { %v421_v11 = vmul.f32 %v1150_v7, %v357_v55 }
 0x574   :  { %v424_v8 = vpop.permute.xlu0 %423 }
 0x575   :  { %v426_v10 = vmul.f32 %v1150_v7, %v424_v8 }
 0x577   :  { %428 = vrot.lane.b32.xlu1 %v426_v10, %s1217_s4 }
 0x5e9   :  { %v429_v12 = vpop.permute.xlu1 %428 }
 0x5ea   :  { %v431_v13 = vadd.f32 %v429_v12, %v421_v11 }
 0x5ec   :  { %1151 = vtanh.f32 %v431_v13 }
 0x5f6   :  { %v1152_v14 = vpop.eup %1151 }
 0x5f7   :  { %434 = vrot.lane.b32.xlu0 %v1152_v14, %s1216_s15 }
 0x669   :  { %v435_v15 = vpop.permute.xlu0 %434 }
 0x66a   :  { %v437_v16 = vmul.f32 %v1150_v7, %v435_v15 }
 0x66c   :  { %v438_v17 = vpack.c.bf16 %v437_v16, %v437_v16 }
 0x66e   :  { %440 = vrot.lane.b32.xlu1 %v438_v17, %s1217_s4 }
 0x6e0   :  { %v441_v18 = vpop.permute.xlu1 %440 }
 0x6e1   :  { %1069 = vmatmul.mubr.msk.bf16.vlgmr.msra.gmra.mrb[8].mxu0 %vm168_vm5, %v441_v18 }
 0x6e2   :  { %1081 = vmatpush3.bf16.msra.mxu0 %v1306_v20  ;;  %1084 = vmatprep.mubr.msk.bf16.mxu0 %vm1215_vm4, %v1214_v9 }
 0x6e3   :  { %1082 = vmatprep.subr.bf16.mxu0 %v1214_v9 }
 0x6e6   :  { %1083 = vmatpush3.bf16.msra.mxu0 %v1314_v22 }
 0x6e7   :  { %1096 = vmatprep.subr.bf16.mxu0 %v1214_v9 }
 0x7b4   :  { %v481_v21 = vpop.f32.mrb[8].mxu0 }
 0x7b5   :  { %v482_v23 = vadd.f32 %v481_v21, %v442_v19  ;;  %v1070_v24 = vpop.f32.mrb[9].mxu0 }
 0x7b6   :  { %v484_v25 = vpop.f32.mrb[10].mxu0  ;;  %v660_v24 = vrot.slane %v1356_v40, 2 }
 0x7b7   :  { %1153 = vtanh.f32 %v482_v23  ;;  %v1071_v26 = vpop.f32.mrb[11].mxu0  ;;  %v961_v28 = vmul.f32 -1.442695, %v482_v23 }
 0x7b9   :  { %1155 = vpow2.f32 %v961_v28 }
 0x7c1   :  { %v1154_v27 = vpop.eup %1153 }
 0x7c2   :  { %496 = vrot.lane.b32.xlu0 %v1154_v27, %s1216_s15 }
 0x7c3   :  { %v1156_v29 = vpop.eup %1155 }
 0x7c4   :  { %v490_v30 = vadd.f32 1.0, %v1156_v29 }
 0x7c6   :  { %1157 = vrcp.f32 %v490_v30 }
 0x7d0   :  { %v1158_v31 = vpop.eup %1157 }
 0x7d1   :  { %v494_v34 = vmul.f32 %v1158_v31, %v431_v13 }
 0x834   :  { %v497_v32 = vpop.permute.xlu0 %496 }
 0x835   :  { %v499_v33 = vmul.f32 %v1158_v31, %v497_v32 }
 0x837   :  { %501 = vrot.lane.b32.xlu1 %v499_v33, %s1217_s4 }
 0x8a9   :  { %v502_v35 = vpop.permute.xlu1 %501 }
 0x8aa   :  { %v504_v37 = vadd.f32 %v502_v35, %v494_v34 }
 0x8ac   :  { %1159 = vtanh.f32 %v504_v37 }
 0x8b6   :  { %v1160_v38 = vpop.eup %1159 }
 0x8b7   :  { %507 = vrot.lane.b32.xlu0 %v1160_v38, %s1216_s15 }
 0x929   :  { %v508_v39 = vpop.permute.xlu0 %507 }
 0x92a   :  { %v510_v41 = vmul.f32 %v1158_v31, %v508_v39 }
 0x92c   :  { %v511_v43 = vpack.c.bf16 %v510_v41, %v510_v41 }
 0x92e   :  { %513 = vrot.lane.b32.xlu1 %v511_v43, %s1217_s4 }
 0x9a0   :  { %v514_v44 = vpop.permute.xlu1 %513 }
 0x9a1   :  { %1077 = vmatmul.mubr.msk.bf16.vlgmr.msra.gmra.mrb[12].mxu1 %vm168_vm5, %v514_v44 }
 0x9a2   :  { %1089 = vmatpush3.bf16.msra.mxu1 %v1306_v20  ;;  %1092 = vmatprep.mubr.msk.bf16.mxu1 %vm1215_vm4, %v1214_v9 }
 0x9a3   :  { %1090 = vmatprep.subr.bf16.mxu1 %v1214_v9 }
 0x9a6   :  { %1091 = vmatpush3.bf16.msra.mxu1 %v1314_v22 }
 0x9a7   :  { %1104 = vmatprep.subr.bf16.mxu1 %v1214_v9 }
 0xa74   :  { %v554_v46 = vpop.f32.mrb[12].mxu1 }
 0xa75   :  { %v555_v47 = vadd.f32 %v554_v46, %v515_v45  ;;  %v1078_v48 = vpop.f32.mrb[13].mxu1  ;;  %v733_v45 = vrot.slane %v1356_v40, 4 }
 0xa76   :  { %v557_v49 = vpop.f32.mrb[14].mxu1 }
 0xa77   :  { %1161 = vtanh.f32 %v555_v47  ;;  %v1079_v50 = vpop.f32.mrb[15].mxu1  ;;  %v963_v52 = vmul.f32 -1.442695, %v555_v47 }
 0xa79   :  { %1163 = vpow2.f32 %v963_v52 }
 0xa81   :  { %v1162_v51 = vpop.eup %1161 }
 0xa82   :  { %569 = vrot.lane.b32.xlu0 %v1162_v51, %s1216_s15 }
 0xa83   :  { %v1164_v53 = vpop.eup %1163 }
 0xa84   :  { %v563_v54 = vadd.f32 1.0, %v1164_v53 }
 0xa86   :  { %1165 = vrcp.f32 %v563_v54 }
 0xa90   :  { %v1166_v55 = vpop.eup %1165 }
 0xa91   :  { %v567_v36 = vmul.f32 %v1166_v55, %v504_v37 }
 0xaf4   :  { %v570_v56 = vpop.permute.xlu0 %569 }
 0xaf5   :  { %v572_v57 = vmul.f32 %v1166_v55, %v570_v56 }
 0xaf7   :  { %574 = vrot.lane.b32.xlu1 %v572_v57, %s1217_s4 }
 0xb69   :  { %v575_v58 = vpop.permute.xlu1 %574 }
 0xb6a   :  { %v577_v59 = vadd.f32 %v575_v58, %v567_v36 }
 0xb6c   :  { %1167 = vtanh.f32 %v577_v59 }
 0xb76   :  { %v1168_v60 = vpop.eup %1167 }
 0xb77   :  { %580 = vrot.lane.b32.xlu0 %v1168_v60, %s1216_s15 }
 0xbe9   :  { %v581_v61 = vpop.permute.xlu0 %580 }
 0xbea   :  { %v583_v62 = vmul.f32 %v1166_v55, %v581_v61  ;;  %v951_v61 = vld [vmem:[%s1457_s6] ss:$0 sm:$0xff] }
 0xbec   :  { %v584_v63 = vpack.c.bf16 %v583_v62, %v583_v62  ;;  %v276_v62 = vadd.f32 %v951_v61, %v1358_v42 }
 0xbee   :  { %586 = vrot.lane.b32.xlu1 %v584_v63, %s1217_s4 }
 0xc60   :  { %v587_v0 = vpop.permute.xlu1 %586 }
 0xc61   :  { %1085 = vmatmul.mubr.msk.bf16.vlgmr.msra.gmra.mrb[12].mxu0 %vm168_vm5, %v587_v0 }
 0xc62   :  { %1097 = vmatpush3.bf16.msra.mxu0 %v1306_v20  ;;  %1100 = vmatprep.mubr.msk.bf16.mxu0 %vm1215_vm4, %v1214_v9 }
 0xc63   :  { %1098 = vmatprep.subr.bf16.mxu0 %v1214_v9 }
 0xc66   :  { %1099 = vmatpush3.bf16.msra.mxu0 %v1314_v22 }
 0xd34   :  { %v625_v1 = vpop.f32.mrb[12].mxu0 }
 0xd35   :  { %v626_v2 = vadd.f32 %v625_v1, %v1356_v40  ;;  %v1086_v3 = vpop.f32.mrb[13].mxu0 }
 0xd36   :  { %v628_v4 = vpop.f32.mrb[14].mxu0  ;;  %v972_v3 = vmul.f32 -1.442695, %v276_v62 }
 0xd37   :  { %1169 = vtanh.f32 %v626_v2  ;;  %v1087_v5 = vpop.f32.mrb[15].mxu0  ;;  %v965_v7 = vmul.f32 -1.442695, %v626_v2 }
 0xd39   :  { %1171 = vpow2.f32 %v965_v7 }
 0xd41   :  { %v1170_v6 = vpop.eup %1169 }
 0xd42   :  { %640 = vrot.lane.b32.xlu0 %v1170_v6, %s1216_s15 }
 0xd43   :  { %v1172_v8 = vpop.eup %1171 }
 0xd44   :  { %v634_v10 = vadd.f32 1.0, %v1172_v8 }
 0xd46   :  { %1173 = vrcp.f32 %v634_v10 }
 0xd50   :  { %v1174_v11 = vpop.eup %1173 }
 0xd51   :  { %v638_v14 = vmul.f32 %v1174_v11, %v577_v59 }
 0xdb4   :  { %v641_v12 = vpop.permute.xlu0 %640 }
 0xdb5   :  { %v643_v13 = vmul.f32 %v1174_v11, %v641_v12 }
 0xdb7   :  { %645 = vrot.lane.b32.xlu1 %v643_v13, %s1217_s4 }
 0xe29   :  { %v646_v15 = vpop.permute.xlu1 %645 }
 0xe2a   :  { %v648_v16 = vadd.f32 %v646_v15, %v638_v14  ;;  %v973_v14 = vld [vmem:[%s1458_s7] ss:$0 sm:$0xff]  ;;  %v806_v15 = vrot.slane %v1356_v40, 6  ;;  %s1218_s7 = smov 96  }
 0xe2c   :  { %1175 = vtanh.f32 %v648_v16 }
 0xe36   :  { %v1176_v17 = vpop.eup %1175 }
 0xe37   :  { %651 = vrot.lane.b32.xlu0 %v1176_v17, %s1216_s15 }
 0xea9   :  { %v652_v18 = vpop.permute.xlu0 %651 }
 0xeaa   :  { %v654_v19 = vmul.f32 %v1174_v11, %v652_v18 }
 0xeac   :  { %v655_v21 = vpack.c.bf16 %v654_v19, %v654_v19 }
 0xeae   :  { %657 = vrot.lane.b32.xlu1 %v655_v21, %s1217_s4 }
 0xf20   :  { %v658_v23 = vpop.permute.xlu1 %657 }
 0xf21   :  { %1093 = vmatmul.mubr.msk.bf16.vlgmr.msra.gmra.mrb[16].mxu1 %vm168_vm5, %v658_v23 }
 0xf22   :  { %1105 = vmatpush3.bf16.msra.mxu1 %v1306_v20  ;;  %1108 = vmatprep.mubr.msk.bf16.mxu1 %vm1215_vm4, %v1214_v9 }
 0xf23   :  { %1106 = vmatprep.subr.bf16.mxu1 %v1214_v9 }
 0xf26   :  { %1107 = vmatpush3.bf16.msra.mxu1 %v1314_v22 }
 0xff4   :  { %v699_v25 = vpop.f32.mrb[16].mxu1 }
 0xff5   :  { %v700_v26 = vadd.f32 %v699_v25, %v660_v24  ;;  %v1094_v27 = vpop.f32.mrb[17].mxu1 }
 0xff6   :  { %v702_v28 = vpop.f32.mrb[18].mxu1 }
 0xff7   :  { %1177 = vtanh.f32 %v700_v26  ;;  %v1095_v29 = vpop.f32.mrb[19].mxu1  ;;  %v967_v31 = vmul.f32 -1.442695, %v700_v26 }
 0xff9   :  { %1179 = vpow2.f32 %v967_v31 }
0x1001   :  { %v1178_v30 = vpop.eup %1177 }
0x1002   :  { %714 = vrot.lane.b32.xlu0 %v1178_v30, %s1216_s15 }
0x1003   :  { %v1180_v20 = vpop.eup %1179 }
0x1004   :  { %v708_v32 = vadd.f32 1.0, %v1180_v20 }
0x1006   :  { %1181 = vrcp.f32 %v708_v32 }
0x1010   :  { %v1182_v33 = vpop.eup %1181 }
0x1011   :  { %v712_v22 = vmul.f32 %v1182_v33, %v648_v16 }
0x1074   :  { %v715_v9 = vpop.permute.xlu0 %714 }
0x1075   :  { %v717_v34 = vmul.f32 %v1182_v33, %v715_v9 }
0x1077   :  { %719 = vrot.lane.b32.xlu1 %v717_v34, %s1217_s4 }
0x10e9   :  { %v720_v35 = vpop.permute.xlu1 %719 }
0x10ea   :  { %v722_v37 = vadd.f32 %v720_v35, %v712_v22 }
0x10ec   :  { %1183 = vtanh.f32 %v722_v37 }
0x10f6   :  { %v1184_v38 = vpop.eup %1183 }
0x10f7   :  { %725 = vrot.lane.b32.xlu0 %v1184_v38, %s1216_s15 }
0x1169   :  { %v726_v39 = vpop.permute.xlu0 %725 }
0x116a   :  { %v728_v41 = vmul.f32 %v1182_v33, %v726_v39  ;;  %v14_v33 = vstv %s1459_s8 }
0x116b   :  { %15 = vst [vmem:[#allocation2] sm:$0x1] %v14_v33 }
0x116c   :  { %v729_v43 = vpack.c.bf16 %v728_v41, %v728_v41 }
0x116e   :  { %731 = vrot.lane.b32.xlu1 %v729_v43, %s1217_s4 }
0x11e0   :  { %v732_v44 = vpop.permute.xlu1 %731 }
0x11e1   :  { %1101 = vmatmul.mubr.msk.bf16.vlgmr.msra.gmra.mrb[16].mxu0 %vm168_vm5, %v732_v44 }
0x12b4   :  { %v772_v46 = vpop.f32.mrb[16].mxu0 }
0x12b5   :  { %v773_v47 = vadd.f32 %v772_v46, %v733_v45  ;;  %v1102_v48 = vpop.f32.mrb[17].mxu0  ;;  %v974_v45 = vld [vmem:[#allocation2] ss:$0 sm:$0xff] }
0x12b6   :  { %v775_v49 = vpop.f32.mrb[18].mxu0 }
0x12b7   :  { %1185 = vtanh.f32 %v773_v47  ;;  %v1103_v50 = vpop.f32.mrb[19].mxu0  ;;  %v969_v52 = vmul.f32 -1.442695, %v773_v47 }
0x12b9   :  { %1187 = vpow2.f32 %v969_v52 }
0x12c1   :  { %v1186_v51 = vpop.eup %1185 }
0x12c2   :  { %787 = vrot.lane.b32.xlu0 %v1186_v51, %s1216_s15 }
0x12c3   :  { %v1188_v53 = vpop.eup %1187 }
0x12c4   :  { %v781_v54 = vadd.f32 1.0, %v1188_v53 }
0x12c6   :  { %1189 = vrcp.f32 %v781_v54 }
0x12d0   :  { %v1190_v55 = vpop.eup %1189 }
0x12d1   :  { %v785_v36 = vmul.f32 %v1190_v55, %v722_v37 }
0x1334   :  { %v788_v56 = vpop.permute.xlu0 %787 }
0x1335   :  { %v790_v57 = vmul.f32 %v1190_v55, %v788_v56 }
0x1337   :  { %792 = vrot.lane.b32.xlu1 %v790_v57, %s1217_s4 }
0x13a9   :  { %v793_v58 = vpop.permute.xlu1 %792 }
0x13aa   :  { %v795_v59 = vadd.f32 %v793_v58, %v785_v36 }
0x13ac   :  { %1191 = vtanh.f32 %v795_v59 }
0x13ad   :  { %1193 = vtanh.f32 %v276_v62 }
0x13ae   :  { %1195 = vpow2.f32 %v972_v3 }
0x13b6   :  { %v1192_v60 = vpop.eup %1191 }
0x13b7   :  { %798 = vrot.lane.b32.xlu0 %v1192_v60, %s1216_s15  ;;  %v1194_v2 = vpop.eup %1193 }
0x13b8   :  { %v1196_v4 = vpop.eup %1195 }
0x13b9   :  { %v878_v5 = vadd.f32 1.0, %v1196_v4 }
0x13bb   :  { %1197 = vrcp.f32 %v878_v5 }
0x13c5   :  { %v1198_v7 = vpop.eup %1197 }
0x13c6   :  { %v882_v10 = vmul.f32 0.0, %v1198_v7 }
0x1429   :  { %v799_v63 = vpop.permute.xlu0 %798 }
0x142a   :  { %v801_v0 = vmul.f32 %v1190_v55, %v799_v63 }
0x142c   :  { %v802_v1 = vpack.c.bf16 %v801_v0, %v801_v0 }
0x142e   :  { %804 = vrot.lane.b32.xlu1 %v802_v1, %s1217_s4 }
0x1432   :  { %884 = vrot.lane.b32.xlu1 %v1194_v2, %s1216_s15 }
0x14a0   :  { %v805_v6 = vpop.permute.xlu1 %804 }
0x14a1   :  { %1109 = vmatmul.mubr.msk.bf16.vlgmr.msra.gmra.mrb[20].mxu1 %vm168_vm5, %v805_v6 }
0x14a4   :  { %v885_v8 = vpop.permute.xlu1 %884 }
0x14a5   :  { %v887_v42 = vmul.f32 %v1198_v7, %v885_v8 }
0x14a7   :  { %889 = vrot.lane.b32.xlu1 %v887_v42, %s1217_s4 }
0x1519   :  { %v890_v11 = vpop.permute.xlu1 %889 }
0x151a   :  { %v892_v12 = vadd.f32 %v890_v11, %v882_v10 }
0x151c   :  { %1199 = vtanh.f32 %v892_v12 }
0x1526   :  { %v1200_v13 = vpop.eup %1199 }
0x1527   :  { %895 = vrot.lane.b32.xlu1 %v1200_v13, %s1216_s15 }
0x152b   :  { %909 = vrot.lane.b32.xlu1 %v973_v14, %s1216_s15 }
0x1574   :  { %v845_v16 = vpop.f32.mrb[20].mxu1 }
0x1575   :  { %v846_v17 = vadd.f32 %v845_v16, %v806_v15  ;;  %v1110_v18 = vpop.f32.mrb[21].mxu1 }
0x1576   :  { %v848_v19 = vpop.f32.mrb[22].mxu1 }
0x1577   :  { %1201 = vtanh.f32 %v846_v17  ;;  %v1111_v21 = vpop.f32.mrb[23].mxu1  ;;  %v971_v24 = vmul.f32 -1.442695, %v846_v17 }
0x1579   :  { %1203 = vpow2.f32 %v971_v24 }
0x1581   :  { %v1202_v23 = vpop.eup %1201 }
0x1582   :  { %860 = vrot.lane.b32.xlu0 %v1202_v23, %s1216_s15 }
0x1583   :  { %v1204_v25 = vpop.eup %1203 }
0x1584   :  { %v854_v26 = vadd.f32 1.0, %v1204_v25 }
0x1586   :  { %1205 = vrcp.f32 %v854_v26 }
0x1590   :  { %v1206_v27 = vpop.eup %1205 }
0x1591   :  { %v858_v40 = vmul.f32 %v1206_v27, %v795_v59 }
0x1599   :  { %v896_v32 = vpop.permute.xlu1 %895 }
0x159a   :  { %v898_v22 = vmul.f32 %v1198_v7, %v896_v32 }
0x159d   :  { %v910_v34 = vpop.permute.xlu1 %909 }
0x159e   :  { %v912_v38 = vmul.f32 %v910_v34, %v898_v22 }
0x15f4   :  { %v861_v28 = vpop.permute.xlu0 %860 }
0x15f5   :  { %v863_v29 = vmul.f32 %v1206_v27, %v861_v28 }
0x15f7   :  { %865 = vrot.lane.b32.xlu0 %v863_v29, %s1217_s4 }
0x1669   :  { %v866_v30 = vpop.permute.xlu0 %865 }
0x166a   :  { %v868_v31 = vadd.f32 %v866_v30, %v858_v40 }
0x166c   :  { %1207 = vtanh.f32 %v868_v31 }
0x1676   :  { %v1208_v20 = vpop.eup %1207 }
0x1677   :  { %871 = vrot.lane.b32.xlu0 %v1208_v20, %s1216_s15 }
0x167b   :  { %905 = vrot.lane.b32.xlu0 %v973_v14, %s1218_s7 }
0x16e9   :  { %v872_v9 = vpop.permute.xlu0 %871 }
0x16ea   :  { %v874_v35 = vmul.f32 %v1206_v27, %v872_v9 }
0x16ed   :  { %v906_v37 = vpop.permute.xlu0 %905 }
0x16ee   :  { %v908_v39 = vmul.f32 %v906_v37, %v874_v35 }
0x16f0   :  { %v913_v41 = vadd.f32 %v912_v38, %v908_v39 }
0x16f2   :  { %915 = vrot.lane.b32.xlu0 %v913_v41, %s1217_s4 }
0x1764   :  { %v916_v43 = vpop.permute.xlu0 %915 }
0x1765   :  { %v919_v44 = vsel %vm918_vm6, %v916_v43, 0.0 }
0x1766   :  { %920 = vadd.xlane.f32.xlu1 %v919_v44 }
0x17f3   :  { %v921_v46 = vpop.xlane.xlu1 %920 }
0x17f4   :  { %v929_v47 = vadd.f32 %v974_v45, %v921_v46 }
0x17f6   :  { %v975_v48 = vmul.f32 -1.442695, %v929_v47 }
0x17f8   :  { %1209 = vpow2.f32 %v975_v48 }
0x1802   :  { %v1210_v49 = vpop.eup %1209 }
0x1803   :  { %v933_v50 = vadd.f32 1.0, %v1210_v49 }
0x1805   :  { %1211 = vrcp.f32 %v933_v50 }
0x180f   :  { %v1212_v51 = vpop.eup %1211 }
0x1810   :  { %937 = vst.msk [vmem:[%s1460_s9] sm:$0x3] %vm936_vm7, %v1212_v51 }

</bundles_post_ra>
